<compile_context>
chip_gen: v7x
topology: tpu7x:2x2x1
jax: 0.10.0
libtpu: 0.0.40
codegen_flags: <defaults>
</compile_context>

<pallas_src>
import functools

import jax
import jax.numpy as jnp
from jax.experimental import pallas as pl
from jax.experimental.pallas import tpu as pltpu


def _round_up(x, m):
    return ((x + m - 1) // m) * m


# ----------------------------------------------------------------------------
# Pallas kernels
# ----------------------------------------------------------------------------
def _matmul_bn_oneshot_kernel(*refs, relu, has_residual):
    """Single-K-tile matmul + folded-BN shift (+ residual) (+ ReLU).
    No scratch accumulator: the full K extent is resident in VMEM."""
    if has_residual:
        x_ref, w_ref, shift_ref, res_ref, o_ref = refs
    else:
        x_ref, w_ref, shift_ref, o_ref = refs
        res_ref = None

    out = jnp.dot(x_ref[...], w_ref[...], preferred_element_type=jnp.float32)
    out = out + shift_ref[...]
    if has_residual:
        out = out + res_ref[...]
    if relu:
        out = jnp.maximum(out, 0.0)
    o_ref[...] = out


def _matmul_bn_ktiled_kernel(*refs, relu, has_residual):
    """K-tiled (cols @ w) into f32 VMEM accumulator; epilogue adds folded BN
    shift (+ residual) (+ ReLU) and stores a lane-dense f32 tile."""
    if has_residual:
        x_ref, w_ref, shift_ref, res_ref, o_ref, acc_ref = refs
    else:
        x_ref, w_ref, shift_ref, o_ref, acc_ref = refs
        res_ref = None

    k = pl.program_id(2)

    @pl.when(k == 0)
    def _():
        acc_ref[...] = jnp.zeros_like(acc_ref)

    acc_ref[...] += jnp.dot(x_ref[...], w_ref[...],
                            preferred_element_type=jnp.float32)

    @pl.when(k == pl.num_programs(2) - 1)
    def _():
        out = acc_ref[...] + shift_ref[...]
        if has_residual:
            out = out + res_ref[...]
        if relu:
            out = jnp.maximum(out, 0.0)
        o_ref[...] = out


_MAX_ONESHOT_K = 512  # full-K tile when the padded K fits in one tile


def matmul_bn(cols, w2, shift, res=None, *, relu):
    """cols: (M, K) f32, w2: (K, Cout) f32 (BN scale already folded in),
    shift: (1, Cout) f32, res: optional (M, Cout) f32.  Returns (M, Cout) f32."""
    M, K = cols.shape
    Cout = w2.shape[1]

    TM = min(256, _round_up(M, 8))
    TN = 128
    Kp_min = _round_up(K, 128)
    one_shot = Kp_min <= _MAX_ONESHOT_K
    TK = Kp_min if one_shot else 128

    Mp = _round_up(M, TM)
    Kp = _round_up(K, TK)
    Np = _round_up(Cout, TN)

    # bf16 matmul operands (accumulation stays f32), zero-padded to tile sizes.
    cols_p = jnp.pad(cols.astype(jnp.bfloat16), ((0, Mp - M), (0, Kp - K)))
    w2_p = jnp.pad(w2.astype(jnp.bfloat16), ((0, Kp - K), (0, Np - Cout)))
    shift_p = jnp.pad(shift.astype(jnp.float32), ((0, 0), (0, Np - Cout)))

    has_residual = res is not None
    if has_residual:
        res_p = jnp.pad(res.astype(jnp.float32), ((0, Mp - M), (0, Np - Cout)))

    bytes_accessed = (Mp * Kp * 2 + Kp * Np * 2 + Mp * Np * 4 + Np * 4
                      + (Mp * Np * 4 if has_residual else 0))
    cost = pl.CostEstimate(flops=2 * Mp * Kp * Np,
                           transcendentals=0,
                           bytes_accessed=bytes_accessed)

    if one_shot:
        # 2-D grid (M, N); the whole K extent lives in one VMEM tile.
        in_specs = [
            pl.BlockSpec((TM, TK), lambda i, j: (i, 0)),
            pl.BlockSpec((TK, TN), lambda i, j: (0, j)),
            pl.BlockSpec((1, TN), lambda i, j: (0, j)),
        ]
        args = [cols_p, w2_p, shift_p]
        if has_residual:
            in_specs.append(pl.BlockSpec((TM, TN), lambda i, j: (i, j)))
            args.append(res_p)

        kernel = functools.partial(_matmul_bn_oneshot_kernel, relu=relu,
                                   has_residual=has_residual)
        out = pl.pallas_call(
            kernel,
            out_shape=jax.ShapeDtypeStruct((Mp, Np), jnp.float32),
            grid=(Mp // TM, Np // TN),
            in_specs=in_specs,
            out_specs=pl.BlockSpec((TM, TN), lambda i, j: (i, j)),
            compiler_params=pltpu.CompilerParams(
                dimension_semantics=("parallel", "parallel"),
                vmem_limit_bytes=32 * 1024 * 1024,
            ),
            cost_estimate=cost,
        )(*args)
    else:
        # 3-D grid with a K reduction axis and an f32 VMEM accumulator.
        in_specs = [
            pl.BlockSpec((TM, TK), lambda i, j, k: (i, k)),
            pl.BlockSpec((TK, TN), lambda i, j, k: (k, j)),
            pl.BlockSpec((1, TN), lambda i, j, k: (0, j)),
        ]
        args = [cols_p, w2_p, shift_p]
        if has_residual:
            in_specs.append(pl.BlockSpec((TM, TN), lambda i, j, k: (i, j)))
            args.append(res_p)

        kernel = functools.partial(_matmul_bn_ktiled_kernel, relu=relu,
                                   has_residual=has_residual)
        out = pl.pallas_call(
            kernel,
            out_shape=jax.ShapeDtypeStruct((Mp, Np), jnp.float32),
            grid=(Mp // TM, Np // TN, Kp // TK),
            in_specs=in_specs,
            out_specs=pl.BlockSpec((TM, TN), lambda i, j, k: (i, j)),
            scratch_shapes=[pltpu.VMEM((TM, TN), jnp.float32)],
            compiler_params=pltpu.CompilerParams(
                dimension_semantics=("parallel", "parallel", "arbitrary"),
                vmem_limit_bytes=32 * 1024 * 1024,
            ),
            cost_estimate=cost,
        )(*args)

    return out[:M, :Cout]


def _head_kernel(f_ref, w_ref, b_ref, o_ref):
    """Global average pool over the spatial axis, linear layer, softmax."""
    feat = jnp.mean(f_ref[...], axis=1)  # (N, Cp)
    logits = jnp.dot(feat, w_ref[...],
                     preferred_element_type=jnp.float32) + b_ref[...]
    m = jnp.max(logits, axis=-1, keepdims=True)
    e = jnp.exp(logits - m)
    denom = jnp.sum(e, axis=-1, keepdims=True)
    o_ref[...] = e * pl.reciprocal(denom, approx=True)


def head(feat, fc_w, fc_b, num_classes):
    """feat: (N, HW, C) f32, fc_w: (C, num_classes), fc_b: (1, num_classes)."""
    N, HW, C = feat.shape
    Cp = _round_up(C, 128)
    NCp = _round_up(num_classes, 128)

    feat_p = jnp.pad(feat.astype(jnp.float32), ((0, 0), (0, 0), (0, Cp - C)))
    w_p = jnp.pad(fc_w.astype(jnp.float32),
                  ((0, Cp - C), (0, NCp - num_classes)))
    # Padded classes get a huge negative bias so softmax gives them ~0 weight.
    b_p = jnp.pad(fc_b.astype(jnp.float32), ((0, 0), (0, NCp - num_classes)),
                  constant_values=-1e30)

    cost = pl.CostEstimate(flops=2 * N * Cp * NCp + 4 * N * NCp,
                           transcendentals=N * NCp,
                           bytes_accessed=N * HW * Cp * 4 + Cp * NCp * 4
                           + NCp * 4 + N * NCp * 4)

    out = pl.pallas_call(
        _head_kernel,
        out_shape=jax.ShapeDtypeStruct((N, NCp), jnp.float32),
        grid=(1,),
        in_specs=[
            pl.BlockSpec((N, HW, Cp), lambda i: (0, 0, 0)),
            pl.BlockSpec((Cp, NCp), lambda i: (0, 0)),
            pl.BlockSpec((1, NCp), lambda i: (0, 0)),
        ],
        out_specs=pl.BlockSpec((N, NCp), lambda i: (0, 0)),
        compiler_params=pltpu.CompilerParams(
            vmem_limit_bytes=32 * 1024 * 1024),
        cost_estimate=cost,
    )(feat_p, w_p, b_p)

    return out[:, :num_classes]


# ----------------------------------------------------------------------------
# Plain-JAX glue: im2col, BN folding, block / network composition
# ----------------------------------------------------------------------------
def im2col(x, kh, kw, stride, padding):
    """x: NHWC -> (N*Ho*Wo, kh*kw*C) patch matrix."""
    N, H, W, C = x.shape
    xp = jnp.pad(x, ((0, 0), (padding, padding), (padding, padding), (0, 0)))
    Ho = (H + 2 * padding - kh) // stride + 1
    Wo = (W + 2 * padding - kw) // stride + 1
    patches = []
    for i in range(kh):
        for j in range(kw):
            patches.append(xp[:, i:i + Ho * stride:stride,
                              j:j + Wo * stride:stride, :])
    cols = jnp.stack(patches, axis=-2)  # (N, Ho, Wo, kh*kw, C)
    return cols.reshape(N * Ho * Wo, kh * kw * C), Ho, Wo


def fold_bn_into_weights(w2, bn, eps=1e-5):
    """Fold BN scale into the (K, Cout) weight matrix; return (w2', shift)."""
    scale = bn["gamma"] / jnp.sqrt(bn["var"] + eps)         # (Cout,)
    shift = bn["beta"] - bn["mean"] * scale                  # (Cout,)
    return w2 * scale[None, :], shift.reshape(1, -1)


def conv_bn(x, w, bn, *, stride, padding, relu, residual=None):
    """Conv (no bias) + folded BatchNorm (+ residual) (+ ReLU), via Pallas matmul."""
    kh, kw, cin, cout = w.shape
    cols, Ho, Wo = im2col(x, kh, kw, stride, padding)
    N = x.shape[0]
    M = N * Ho * Wo
    w2 = w.reshape(kh * kw * cin, cout)
    w2, shift = fold_bn_into_weights(w2, bn)
    res = None if residual is None else residual.reshape(M, cout)
    out = matmul_bn(cols, w2, shift, res, relu=relu)
    return out.reshape(N, Ho, Wo, cout)


def basic_block(x, blk):
    s = blk["stride"]
    out = conv_bn(x, blk["conv1_w"], blk["bn1"], stride=s, padding=1, relu=True)
    if "sc_w" in blk:
        shortcut = conv_bn(x, blk["sc_w"], blk["sc_bn"], stride=s, padding=0,
                           relu=False)
    else:
        shortcut = x
    out = conv_bn(out, blk["conv2_w"], blk["bn2"], stride=1, padding=1,
                  relu=True, residual=shortcut)
    return out


def resnet_forward(x_nchw, params, num_classes=10):
    # layout: NCHW (PyTorch) -> NHWC internal
    x = jnp.transpose(x_nchw, (0, 2, 3, 1)).astype(jnp.float32)
    out = conv_bn(x, params["conv1_w"], params["bn1"], stride=2, padding=2,
                  relu=True)
    for layer_name in ("layer1", "layer2", "layer3", "layer4"):
        for blk in params[layer_name]:
            out = basic_block(out, blk)
    N, H, W, C = out.shape
    feat = out.reshape(N, H * W, C)  # adaptive avg pool handled in head kernel
    # dropout(p=0.0) is the identity
    return head(feat, params["fc_w"], params["fc_b"], num_classes)


# ----------------------------------------------------------------------------
# Deterministic parameter initialization
# ----------------------------------------------------------------------------
class KeyIter:
    def __init__(self, key):
        self.key = key

    def __call__(self):
        self.key, sub = jax.random.split(self.key)
        return sub


def conv_init(ki, kh, kw, cin, cout):
    fan_in = kh * kw * cin
    return (jax.random.normal(ki(), (kh, kw, cin, cout), jnp.float32)
            * (1.0 / jnp.sqrt(float(fan_in))))


def bn_init(ki, c):
    return {
        "gamma": 1.0 + 0.1 * jax.random.normal(ki(), (c,), jnp.float32),
        "beta": 0.1 * jax.random.normal(ki(), (c,), jnp.float32),
        "mean": 0.1 * jax.random.normal(ki(), (c,), jnp.float32),
        "var": 1.0 + 0.1 * jnp.abs(jax.random.normal(ki(), (c,), jnp.float32)),
    }


def make_layer_params(ki, in_c, out_c, num_blocks, stride):
    strides = [stride] + [1] * (num_blocks - 1)
    blocks = []
    for s in strides:
        blk = {
            "stride": s,
            "conv1_w": conv_init(ki, 3, 3, in_c, out_c),
            "bn1": bn_init(ki, out_c),
            "conv2_w": conv_init(ki, 3, 3, out_c, out_c),
            "bn2": bn_init(ki, out_c),
        }
        if s != 1 or in_c != out_c:
            blk["sc_w"] = conv_init(ki, 1, 1, in_c, out_c)
            blk["sc_bn"] = bn_init(ki, out_c)
        blocks.append(blk)
        in_c = out_c
    return blocks, in_c


def init_resnet_params(key, num_blocks=(1, 1, 1, 1), num_classes=10,
                       channel_factor=1 / 16):
    ki = KeyIter(key)
    c1 = int(64 * channel_factor)    # 4
    c2 = int(128 * channel_factor)   # 8
    c3 = int(265 * channel_factor)   # 16  (matches the module's int(265 * cf))
    c4 = int(512 * channel_factor)   # 32
    params = {}
    params["conv1_w"] = conv_init(ki, 5, 5, 3, c1)
    params["bn1"] = bn_init(ki, c1)
    cin = c1
    params["layer1"], cin = make_layer_params(ki, cin, c1, num_blocks[0], stride=1)
    params["layer2"], cin = make_layer_params(ki, cin, c2, num_blocks[1], stride=2)
    params["layer3"], cin = make_layer_params(ki, cin, c3, num_blocks[2], stride=2)
    params["layer4"], cin = make_layer_params(ki, cin, c4, num_blocks[3], stride=2)
    params["fc_w"] = (jax.random.normal(ki(), (c4, num_classes), jnp.float32)
                      * (1.0 / jnp.sqrt(float(c4))))
    params["fc_b"] = 0.1 * jax.random.normal(ki(), (1, num_classes), jnp.float32)
    return params


# ----------------------------------------------------------------------------
if __name__ == "__main__":
    key = jax.random.PRNGKey(0)
    pkey, xkey = jax.random.split(key)
    params = init_resnet_params(pkey)

    # Small deterministic input, PyTorch NCHW convention: (batch=2, C=3, H=16, W=16)
    x = jax.random.normal(xkey, (2, 3, 16, 16), jnp.float32)

    probs = resnet_forward(x, params)
    probs = jax.block_until_ready(probs)

    assert probs.shape == (2, 10)
    assert bool(jnp.all(jnp.isfinite(probs)))
    # approx=True reciprocal in the softmax denominator -> loose tolerance
    assert bool(jnp.allclose(jnp.sum(probs, axis=1), 1.0, atol=1e-2))
    assert bool(jnp.all(probs >= 0.0))
    print("KERNEL_OK")
</pallas_src>

<mosaic_0001>
module attributes {stable_mosaic.version = 11 : i64} {
  func.func @_matmul_bn_oneshot_kernel(%arg0: i32, %arg1: i32, %arg2: memref<128x128xbf16, #tpu.memory_space<vmem>>, %arg3: memref<128x128xbf16, #tpu.memory_space<vmem>>, %arg4: memref<1x128xf32, #tpu.memory_space<vmem>>, %arg5: memref<128x128xf32, #tpu.memory_space<vmem>>) attributes {dimension_semantics = [#tpu.dimension_semantics<parallel>, #tpu.dimension_semantics<parallel>], iteration_bounds = array<i64: 1, 1>, scalar_prefetch = 0 : i64, scratch_operands = 0 : i64, tpu.core_type = #tpu.core_type<tc>, window_params = [{transform_indices = @transform_0, window_bounds = array<i64: 128, 128>}, {transform_indices = @transform_1, window_bounds = array<i64: 128, 128>}, {transform_indices = @transform_2, window_bounds = array<i64: 1, 128>}, {transform_indices = @transform_3, window_bounds = array<i64: 128, 128>}]} {
    %c0 = arith.constant 0 : index
    %c0_0 = arith.constant 0 : index
    %0 = vector.load %arg2[%c0, %c0_0] : memref<128x128xbf16, #tpu.memory_space<vmem>>, vector<128x128xbf16>
    %c0_1 = arith.constant 0 : index
    %c0_2 = arith.constant 0 : index
    %1 = vector.load %arg3[%c0_1, %c0_2] : memref<128x128xbf16, #tpu.memory_space<vmem>>, vector<128x128xbf16>
    %cst = arith.constant dense<0.000000e+00> : vector<128x128xf32>
    %2 = tpu.matmul %0, %1, %cst {dimension_numbers = #tpu.dot_dimension_numbers<[1], [0], [0], [1], [0, 0, 1, 1], [], []>} : vector<128x128xbf16>, vector<128x128xbf16>, vector<128x128xf32> -> vector<128x128xf32>
    %c0_3 = arith.constant 0 : index
    %c0_4 = arith.constant 0 : index
    %3 = vector.load %arg4[%c0_3, %c0_4] : memref<1x128xf32, #tpu.memory_space<vmem>>, vector<1x128xf32>
    %4 = vector.broadcast %3 : vector<1x128xf32> to vector<128x128xf32>
    %5 = arith.addf %2, %4 : vector<128x128xf32>
    %cst_5 = arith.constant 0.000000e+00 : f32
    %6 = vector.broadcast %cst_5 : f32 to vector<128x128xf32>
    %7 = arith.maximumf %5, %6 : vector<128x128xf32>
    %c0_6 = arith.constant 0 : index
    %c0_7 = arith.constant 0 : index
    %8 = vector.load %arg5[%c0_6, %c0_7] : memref<128x128xf32, #tpu.memory_space<vmem>>, vector<128x128xf32>
    tpu.vector_store %arg5[%c0_6, %c0_7], %7 {strides = array<i32>} : memref<128x128xf32, #tpu.memory_space<vmem>>, vector<128x128xf32>,
    return
  }
  func.func @transform_0(%arg0: i32, %arg1: i32) -> (i32, i32) {
    %c0_i32 = arith.constant 0 : i32
    %c0_i32_0 = arith.constant 0 : i32
    return %arg0, %c0_i32 : i32, i32
  }
  func.func @transform_1(%arg0: i32, %arg1: i32) -> (i32, i32) {
    %c0_i32 = arith.constant 0 : i32
    %c0_i32_0 = arith.constant 0 : i32
    return %c0_i32, %arg1 : i32, i32
  }
  func.func @transform_2(%arg0: i32, %arg1: i32) -> (i32, i32) {
    %c0_i32 = arith.constant 0 : i32
    %c0_i32_0 = arith.constant 0 : i32
    return %c0_i32, %arg1 : i32, i32
  }
  func.func @transform_3(%arg0: i32, %arg1: i32) -> (i32, i32) {
    %c0_i32 = arith.constant 0 : i32
    return %arg0, %arg1 : i32, i32
  }
}

</mosaic_0001>

<bundles_post_ra>
// kernel: tpu_custom_call.1
= control target key start
LH: loop header
LB: loop body
LE: loop exit
PB: predicated region body
PF: predicated region fallthrough
CT: control target
= control target key end

     0   :  { %8 = vsyncpa [#allocation3], 0  ;;  %s568_s0 = inlined_call_operand.hbm [shape: bf16[128,128], index: 0, kind: input, shape index: {}]   ;;  %s569_s1 = inlined_call_operand.hbm [shape: bf16[128,128], index: 1, kind: input, shape index: {}]   ;;  %s570_s2 = inlined_call_operand.vmem [shape: f32[1,128], index: 2, kind: input, shape index: {}]   ;;  %s571_s3 = inlined_call_operand.hbm [shape: f32[128,128], index: 3, kind: output, shape index: {}]  }
   0x1   :  { %9 = vsyncpa [#allocation6], 0 }
   0x2   :  { %10 = vsyncpa [#allocation4], 0  ;;  %s502_s12 = smov [#allocation2]   ;;  %s430_s16 = scalar_lea.hbm %s568_s0, 1024 }
   0x3   :  { %s16_s13 = sshll.u32 %s502_s12, 4  ;;  %p431_p0 = scmp.ne.s32.totalorder %s568_s0, %s430_s16  ;;  %s17_s13 = int_to_ptr.vmem [resolvable:$true] %s16_s13 }
   0x4   :  { %p434_p1 = scmp.lt.u32.totalorder %s430_s16, %s568_s0 }
   0x6   :  { %p436_p2 = pnand %p434_p1, %p431_p0 }
   0x8   :  { %439 = shalt.err (!%p436_p2)
}
   0x9   :  { %s440_s21 = scalar_lea.vmem %s17_s13, 1024  ;;  %p445_p4 = scmp.lt.s32.totalorder %s17_s13, %s17_s13 }
   0xa   :  { %p441_p3 = scmp.ne.s32.totalorder %s17_s13, %s440_s21  ;;  %p446_p5 = scmp.lt.s32.totalorder %s440_s21, %s440_s21 }
   0xc   :  { %p447_p6 = por %p446_p5, %p445_p4 }
   0xe   :  { %p448_p7 = pnand %p447_p6, %p441_p3 }
  0x10   :  { %451 = shalt.err (!%p448_p7)
}
  0x11   :  { %s503_s22 = smov 64   ;;  %s504_s23 = smov 4  }
  0x12   :  { %22 = dma.hbm_to_vmem [thread:$0]  %s568_s0, 1024, %s17_s13, [#allocation3], %s503_s22, %s503_s22, %s504_s23  }
  0x13   :  { %s505_s26 = smov [#allocation5]   ;;  %s452_s30 = scalar_lea.hbm %s569_s1, 1024 }
  0x14   :  { %s28_s27 = sshll.u32 %s505_s26, 4  ;;  %p453_p8 = scmp.ne.s32.totalorder %s569_s1, %s452_s30  ;;  %s29_s27 = int_to_ptr.vmem [resolvable:$true] %s28_s27 }
  0x15   :  { %p456_p9 = scmp.lt.u32.totalorder %s452_s30, %s569_s1 }
  0x17   :  { %p458_p10 = pnand %p456_p9, %p453_p8 }
  0x19   :  { %461 = shalt.err (!%p458_p10)
}
  0x1a   :  { %s462_s8 = scalar_lea.vmem %s29_s27, 1024  ;;  %p467_p12 = scmp.lt.s32.totalorder %s29_s27, %s29_s27 }
  0x1b   :  { %p463_p11 = scmp.ne.s32.totalorder %s29_s27, %s462_s8  ;;  %p468_p13 = scmp.lt.s32.totalorder %s462_s8, %s462_s8 }
  0x1d   :  { %p469_p0 = por %p468_p13, %p467_p12 }
  0x1f   :  { %p470_p1 = pnand %p469_p0, %p463_p11 }
  0x21   :  { %473 = shalt.err (!%p470_p1)
}
  0x22   :  { %34 = dma.hbm_to_vmem [thread:$0]  %s569_s1, 1024, %s29_s27, [#allocation6], %s503_s22, %s503_s22, %s504_s23  }
  0x23   :  { %496 = dma.done.wait [#allocation3], 1024  }
  0x24   :  { %497 = vsyncadd [#allocation3], 4294966272 }
  0x25   :  { %498 = dma.done.wait [#allocation6], 1024  }
  0x26   :  { %499 = vsyncadd [#allocation6], 4294966272  ;;  %v414_v0 = vld [vmem:[#allocation5] sm:$0xff]   ;;  %v415_v1 = vld [vmem:[#allocation5 + $0x8] sm:$0xff]  }
  0x27   :  { %359 = vmatprep.subr.bf16.mxu0 %v414_v0  ;;  %391 = vmatprep.subr.bf16.mxu1 %v414_v0  ;;  %v416_v2 = vld [vmem:[#allocation5 + $0x10] sm:$0xff]   ;;  %v417_v3 = vld [vmem:[#allocation5 + $0x18] sm:$0xff]   ;;  %v422_v4 = vld [vmem:[#allocation2] sm:$0xff]  }
  0x28   :  { %360 = vmatpush3.bf16.msra.mxu0 %v414_v0  ;;  %399 = vmatpush3.bf16.msra.mxu1 %v414_v0  ;;  %v423_v5 = vld [vmem:[#allocation2 + $0x20] sm:$0xff]   ;;  %v419_v7 = vld [vmem:[#allocation5 + $0x28] sm:$0xff]   ;;  %v420_v8 = vld [vmem:[#allocation5 + $0x30] sm:$0xff]  }
  0x29   :  { %361 = vmatprep.subr.bf16.mxu0 %v415_v1  ;;  %392 = vmatprep.subr.bf16.mxu1 %v415_v1  ;;  %v418_v6 = vld [vmem:[#allocation5 + $0x20] sm:$0xff]   ;;  %v421_v9 = vld [vmem:[#allocation5 + $0x38] sm:$0xff]   ;;  %v424_v10 = vld [vmem:[#allocation2 + $0x8] sm:$0xff]  }
  0x2a   :  { %375 = vmatprep.mubr.bf16.mxu0 %v422_v4  ;;  %383 = vmatprep.mubr.bf16.mxu1 %v423_v5  ;;  %v425_v11 = vld [vmem:[#allocation2 + $0x28] sm:$0xff]   ;;  %v426_v12 = vld [vmem:[#allocation2 + $0x10] sm:$0xff]   ;;  %v428_v14 = vld [vmem:[#allocation2 + $0x18] sm:$0xff]  }
  0x2b   :  { %v427_v13 = vld [vmem:[#allocation2 + $0x30] sm:$0xff]   ;;  %v429_v15 = vld [vmem:[#allocation2 + $0x38] sm:$0xff]   ;;  %v326_v16 = vld [vmem:[%s570_s2] ss:$0 sm:$0xff]  ;;  %s506_s2 = smov [#allocation7]  }
  0x2c   :  { %362 = vmatpush3.bf16.msra.mxu0 %v415_v1  ;;  %400 = vmatpush3.bf16.msra.mxu1 %v415_v1  ;;  %s313_s11 = sshll.u32 %s506_s2, 4  ;;  %s314_s11 = int_to_ptr.vmem [resolvable:$true] %s313_s11 }
  0x2d   :  { %363 = vmatprep.subr.bf16.mxu0 %v416_v2  ;;  %393 = vmatprep.subr.bf16.mxu1 %v416_v2  ;;  %s474_s12 = scalar_lea.vmem %s314_s11, 2048  ;;  %p479_p3 = scmp.lt.s32.totalorder %s314_s11, %s314_s11 }
  0x2e   :  { %p475_p2 = scmp.ne.s32.totalorder %s314_s11, %s474_s12  ;;  %p480_p4 = scmp.lt.s32.totalorder %s474_s12, %s474_s12 }
  0x30   :  { %364 = vmatpush3.bf16.msra.mxu0 %v416_v2  ;;  %401 = vmatpush3.bf16.msra.mxu1 %v416_v2  ;;  %p481_p5 = por %p480_p4, %p479_p3 }
  0x31   :  { %365 = vmatprep.subr.bf16.mxu0 %v417_v3  ;;  %394 = vmatprep.subr.bf16.mxu1 %v417_v3 }
  0x32   :  { %p482_p6 = pnand %p481_p5, %p475_p2 }
  0x34   :  { %366 = vmatpush3.bf16.msra.mxu0 %v417_v3  ;;  %402 = vmatpush3.bf16.msra.mxu1 %v417_v3 }
  0x35   :  { %367 = vmatprep.subr.bf16.mxu0 %v418_v6  ;;  %395 = vmatprep.subr.bf16.mxu1 %v418_v6 }
  0x38   :  { %368 = vmatpush3.bf16.msra.mxu0 %v418_v6  ;;  %403 = vmatpush3.bf16.msra.mxu1 %v418_v6 }
  0x39   :  { %369 = vmatprep.subr.bf16.mxu0 %v419_v7  ;;  %396 = vmatprep.subr.bf16.mxu1 %v419_v7 }
  0x3c   :  { %370 = vmatpush3.bf16.msra.mxu0 %v419_v7  ;;  %404 = vmatpush3.bf16.msra.mxu1 %v419_v7 }
  0x3d   :  { %371 = vmatprep.subr.bf16.mxu0 %v420_v8  ;;  %397 = vmatprep.subr.bf16.mxu1 %v420_v8 }
  0x40   :  { %372 = vmatpush3.bf16.msra.mxu0 %v420_v8  ;;  %405 = vmatpush3.bf16.msra.mxu1 %v420_v8 }
  0x41   :  { %373 = vmatprep.subr.bf16.mxu0 %v421_v9  ;;  %398 = vmatprep.subr.bf16.mxu1 %v421_v9 }
  0x44   :  { %374 = vmatpush3.bf16.msra.mxu0 %v421_v9  ;;  %406 = vmatpush3.bf16.msra.mxu1 %v421_v9 }
  0x47   :  { %376 = vmatmul.mubr.bf16.vlgmr.msra.gmra.mrb[0].mxu0 %v424_v10  ;;  %384 = vmatmul.mubr.bf16.vlgmr.msra.gmra.mrb[0].mxu1 %v425_v11 }
  0x48   :  { %379 = vmatprep.mubr.bf16.mxu0 %v426_v12  ;;  %387 = vmatprep.mubr.bf16.mxu1 %v427_v13 }
  0x4f   :  { %380 = vmatmul.mubr.bf16.gmra.mrb[4].mxu0 %v428_v14  ;;  %388 = vmatmul.mubr.bf16.gmra.mrb[4].mxu1 %v429_v15 }
 0x11a   :  { %v377_v17 = vpop.f32.mrb[0].mxu0  ;;  %v385_v18 = vpop.f32.mrb[0].mxu1 }
 0x11b   :  { %v222_v19 = vadd.f32 %v377_v17, %v326_v16  ;;  %v254_v20 = vadd.f32 %v385_v18, %v326_v16  ;;  %v213_v21 = vpop.f32.mrb[1].mxu0  ;;  %v245_v22 = vpop.f32.mrb[1].mxu1 }
 0x11c   :  { %v214_v23 = vadd.f32 %v326_v16, %v213_v21  ;;  %v246_v24 = vadd.f32 %v326_v16, %v245_v22  ;;  %v378_v25 = vpop.f32.mrb[2].mxu0  ;;  %v386_v26 = vpop.f32.mrb[2].mxu1 }
 0x11d   :  { %v278_v27 = vmax.f32 %v222_v19, 0.0  ;;  %v286_v28 = vmax.f32 %v254_v20, 0.0  ;;  %v225_v29 = vadd.f32 %v378_v25, %v326_v16  ;;  %v257_v30 = vadd.f32 %v386_v26, %v326_v16  ;;  %v216_v31 = vpop.f32.mrb[3].mxu0  ;;  %v248_v32 = vpop.f32.mrb[3].mxu1 }
 0x11e   :  { %v276_v33 = vmax.f32 %v214_v23, 0.0  ;;  %v284_v34 = vmax.f32 %v246_v24, 0.0  ;;  %v217_v35 = vadd.f32 %v326_v16, %v216_v31  ;;  %v249_v36 = vadd.f32 %v326_v16, %v248_v32 }
 0x11f   :  { %294 = vst [vmem:[#allocation7 + $0x10] sm:$0xff] %v278_v27  ;;  %302 = vst [vmem:[#allocation7 + $0x50] sm:$0xff] %v286_v28  ;;  %v279_v37 = vmax.f32 %v225_v29, 0.0  ;;  %v287_v38 = vmax.f32 %v257_v30, 0.0 }
 0x120   :  { %292 = vst [vmem:[#allocation7] sm:$0xff] %v276_v33  ;;  %300 = vst [vmem:[#allocation7 + $0x40] sm:$0xff] %v284_v34  ;;  %v277_v39 = vmax.f32 %v217_v35, 0.0  ;;  %v285_v40 = vmax.f32 %v249_v36, 0.0 }
 0x121   :  { %295 = vst [vmem:[#allocation7 + $0x18] sm:$0xff] %v279_v37  ;;  %303 = vst [vmem:[#allocation7 + $0x58] sm:$0xff] %v287_v38 }
 0x122   :  { %293 = vst [vmem:[#allocation7 + $0x8] sm:$0xff] %v277_v39  ;;  %301 = vst [vmem:[#allocation7 + $0x48] sm:$0xff] %v285_v40  ;;  %v381_v41 = vpop.f32.mrb[4].mxu0  ;;  %v389_v42 = vpop.f32.mrb[4].mxu1 }
 0x123   :  { %v238_v43 = vadd.f32 %v381_v41, %v326_v16  ;;  %v270_v44 = vadd.f32 %v389_v42, %v326_v16  ;;  %v229_v45 = vpop.f32.mrb[5].mxu0  ;;  %v261_v46 = vpop.f32.mrb[5].mxu1 }
 0x124   :  { %v230_v47 = vadd.f32 %v326_v16, %v229_v45  ;;  %v262_v48 = vadd.f32 %v326_v16, %v261_v46  ;;  %v382_v49 = vpop.f32.mrb[6].mxu0  ;;  %v390_v50 = vpop.f32.mrb[6].mxu1 }
 0x125   :  { %v282_v51 = vmax.f32 %v238_v43, 0.0  ;;  %v290_v52 = vmax.f32 %v270_v44, 0.0  ;;  %v241_v53 = vadd.f32 %v382_v49, %v326_v16  ;;  %v273_v54 = vadd.f32 %v390_v50, %v326_v16  ;;  %v232_v55 = vpop.f32.mrb[7].mxu0  ;;  %v264_v56 = vpop.f32.mrb[7].mxu1 }
 0x126   :  { %v280_v57 = vmax.f32 %v230_v47, 0.0  ;;  %v288_v58 = vmax.f32 %v262_v48, 0.0  ;;  %v233_v59 = vadd.f32 %v326_v16, %v232_v55  ;;  %v265_v60 = vadd.f32 %v326_v16, %v264_v56 }
 0x127   :  { %298 = vst [vmem:[#allocation7 + $0x30] sm:$0xff] %v282_v51  ;;  %306 = vst [vmem:[#allocation7 + $0x70] sm:$0xff] %v290_v52  ;;  %v283_v61 = vmax.f32 %v241_v53, 0.0  ;;  %v291_v62 = vmax.f32 %v273_v54, 0.0 }
 0x128   :  { %296 = vst [vmem:[#allocation7 + $0x20] sm:$0xff] %v280_v57  ;;  %304 = vst [vmem:[#allocation7 + $0x60] sm:$0xff] %v288_v58  ;;  %v281_v63 = vmax.f32 %v233_v59, 0.0  ;;  %v289_v0 = vmax.f32 %v265_v60, 0.0 }
 0x129   :  { %299 = vst [vmem:[#allocation7 + $0x38] sm:$0xff] %v283_v61  ;;  %307 = vst [vmem:[#allocation7 + $0x78] sm:$0xff] %v291_v62 }
 0x12a   :  { %297 = vst [vmem:[#allocation7 + $0x28] sm:$0xff] %v281_v63  ;;  %305 = vst [vmem:[#allocation7 + $0x68] sm:$0xff] %v289_v0 }
 0x12b   :  { %485 = shalt.err (!%p482_p6)
}
 0x12c   :  { %s486_s15 = scalar_lea.hbm %s571_s3, 2048 }
 0x12d   :  { %p487_p7 = scmp.ne.s32.totalorder %s571_s3, %s486_s15  ;;  %p490_p8 = scmp.lt.u32.totalorder %s486_s15, %s571_s3 }
 0x12f   :  { %p492_p9 = pnand %p490_p8, %p487_p7 }
 0x131   :  { %495 = shalt.err (!%p492_p9)
}
 0x132   :  { %s507_s20 = smov 128   ;;  %s508_s21 = smov 8  }
 0x133   :  { %319 = dma.vmem_to_hbm [thread:$0]  %s314_s11, 2048, %s571_s3, [#allocation4], %s507_s20, %s507_s20, %s508_s21  }
 0x134   :  { %500 = dma.done.wait [#allocation4], 2048  }
 0x135   :  { %501 = vsyncadd [#allocation4], 4294965248 }
 0x136   :  { %323 = vsyncpa [#allocation3], 1 }
 0x137   :  { %324 = vsyncpa [#allocation6], 1 }
 0x138   :  { %325 = vsyncpa [#allocation4], 1 }

</bundles_post_ra>
